<compile_context>
chip_gen: v5e
topology: v5e:2x2
jax: 0.10.0
libtpu: 0.0.40
codegen_flags: <defaults>
</compile_context>

<pallas_src>
import math
from functools import partial

import jax
import jax.numpy as jnp
from jax import lax
from jax.experimental import pallas as pl
from jax.experimental.pallas import tpu as pltpu


# ----------------------------- Pallas kernel ------------------------------

def _layernorm(x, w, b, eps=1e-5):
    mu = jnp.mean(x, axis=-1, keepdims=True)
    var = jnp.mean((x - mu) ** 2, axis=-1, keepdims=True)
    return (x - mu) * lax.rsqrt(var + eps) * w + b


def _encoder_kernel(x_ref, pe_ref,
                    wqkv_ref, bqkv_ref, wo_ref, bo_ref,
                    n1w_ref, n1b_ref,
                    w1_ref, b1_ref, w2_ref, b2_ref,
                    n2w_ref, n2b_ref,
                    nfw_ref, nfb_ref,
                    o_ref, *, n_head):
    d_model = x_ref.shape[-1]
    d_head = d_model // n_head

    # positional encoding add (dropout == identity in eval mode)
    x = x_ref[0] + pe_ref[...]                                   # (S, D)

    # ---------------- self attention (nn.MultiheadAttention) ---------------
    # Weights are pre-transposed to (D, 3D) and the Q rows are pre-scaled by
    # 1/sqrt(d_head) host-side, so this is a single contiguous MXU matmul.
    qkv = jnp.dot(x, wqkv_ref[...],
                  preferred_element_type=jnp.float32) + bqkv_ref[...]   # (S, 3D)

    def split_heads(base):
        return jnp.stack(
            [qkv[:, base + h * d_head: base + (h + 1) * d_head]
             for h in range(n_head)], axis=0)                    # (H, S, dh)

    qh = split_heads(0)
    kh = split_heads(d_model)
    vh = split_heads(2 * d_model)

    # One batched MXU stream over the heads axis (flash-style layout) instead
    # of n_head separate small matmuls.
    s = jnp.einsum('hqd,hkd->hqk', qh, kh,
                   preferred_element_type=jnp.float32)           # (H, S, S)
    s = s - jnp.max(s, axis=-1, keepdims=True)
    p = jnp.exp(s)
    p = p * pl.reciprocal(jnp.sum(p, axis=-1, keepdims=True), approx=True)
    o = jnp.einsum('hqk,hkd->hqd', p, vh,
                   preferred_element_type=jnp.float32)           # (H, S, dh)

    attn = jnp.concatenate([o[h] for h in range(n_head)], axis=-1)   # (S, D)
    attn = jnp.dot(attn, wo_ref[...],
                   preferred_element_type=jnp.float32) + bo_ref[...]

    x = _layernorm(x + attn, n1w_ref[...], n1b_ref[...])

    # ------------------------- feed-forward (relu) -------------------------
    # TODO(synk): for large dim_ff / seq on v7x (64 MiB VMEM) tile the F and
    # query dimensions with accumulator grid axes; not needed at these sizes.
    h1 = jnp.maximum(
        jnp.dot(x, w1_ref[...], preferred_element_type=jnp.float32)
        + b1_ref[...], 0.0)
    ff = jnp.dot(h1, w2_ref[...],
                 preferred_element_type=jnp.float32) + b2_ref[...]
    x = _layernorm(x + ff, n2w_ref[...], n2b_ref[...])

    # --------------------- final TransformerEncoder norm -------------------
    x = _layernorm(x, nfw_ref[...], nfb_ref[...])
    o_ref[0] = x


# ------------------------------ glue / wrapper -----------------------------

def positional_encoding(seq_len, d_model, offset=0):
    pos = jnp.arange(offset, offset + seq_len, dtype=jnp.float32)[:, None]
    div = jnp.exp(jnp.arange(0, d_model, 2, dtype=jnp.float32)
                  * (-math.log(10000.0) / d_model))
    pe = jnp.zeros((seq_len, d_model), dtype=jnp.float32)
    pe = pe.at[:, 0::2].set(jnp.sin(pos * div))
    pe = pe.at[:, 1::2].set(jnp.cos(pos * div))
    return pe


def trans_encoder_forward(src, params, n_head, offset=0):
    """src: (S, B, D) float32 -> (S, B, D) float32 (matches PyTorch)."""
    S, B, D = src.shape
    assert D % n_head == 0
    F_ = params["lin1_w"].shape[0]
    d_head = D // n_head
    scale = 1.0 / math.sqrt(d_head)
    pe = positional_encoding(S, D, offset)

    x = jnp.transpose(src, (1, 0, 2))                            # (B, S, D)

    # Host-side (XLA) weight prep: transpose once so the kernel never calls .T
    # and fold the 1/sqrt(d_head) attention scale into the Q projection.
    in_w, in_b = params["in_proj_w"], params["in_proj_b"]
    wqkv_t = jnp.concatenate([in_w[:D] * scale, in_w[D:]], axis=0).T   # (D, 3D)
    bqkv = jnp.concatenate([in_b[:D] * scale, in_b[D:]]).reshape(1, -1)
    wo_t = params["out_proj_w"].T                                # (D, D)
    w1_t = params["lin1_w"].T                                    # (D, F)
    w2_t = params["lin2_w"].T                                    # (F, D)

    def full(shape):
        # Grid-invariant blocks (weights / biases / positional encoding).
        return pl.BlockSpec(shape, lambda b, _n=len(shape): (0,) * _n)

    in_specs = [
        pl.BlockSpec((1, S, D), lambda b: (b, 0, 0)),            # x
        full((S, D)),                                            # pe
        full((D, 3 * D)), full((1, 3 * D)),                      # in_proj (T)
        full((D, D)), full((1, D)),                              # out_proj (T)
        full((1, D)), full((1, D)),                              # norm1
        full((D, F_)), full((1, F_)),                            # linear1 (T)
        full((F_, D)), full((1, D)),                             # linear2 (T)
        full((1, D)), full((1, D)),                              # norm2
        full((1, D)), full((1, D)),                              # final norm
    ]

    flops = 2 * B * S * D * (3 * D + D + 2 * F_) + 4 * B * S * S * D
    transcendentals = B * S * (n_head * S + 8)
    bytes_accessed = 4 * (2 * B * S * D + S * D + 3 * D * D + 3 * D
                          + D * D + D + 2 * D * F_ + F_ + 7 * D)

    out = pl.pallas_call(
        partial(_encoder_kernel, n_head=n_head),
        out_shape=jax.ShapeDtypeStruct((B, S, D), jnp.float32),
        grid=(B,),
        in_specs=in_specs,
        out_specs=pl.BlockSpec((1, S, D), lambda b: (b, 0, 0)),
        compiler_params=pltpu.CompilerParams(
            dimension_semantics=("parallel",),
            vmem_limit_bytes=32 * 1024 * 1024),
        cost_estimate=pl.CostEstimate(
            flops=int(flops),
            transcendentals=int(transcendentals),
            bytes_accessed=int(bytes_accessed)),
    )(x, pe,
      wqkv_t, bqkv,
      wo_t, params["out_proj_b"].reshape(1, -1),
      params["norm1_w"].reshape(1, -1), params["norm1_b"].reshape(1, -1),
      w1_t, params["lin1_b"].reshape(1, -1),
      w2_t, params["lin2_b"].reshape(1, -1),
      params["norm2_w"].reshape(1, -1), params["norm2_b"].reshape(1, -1),
      params["final_norm_w"].reshape(1, -1),
      params["final_norm_b"].reshape(1, -1))

    return jnp.transpose(out, (1, 0, 2))                         # (S, B, D)


def init_params(key, d_model, dim_ff):
    ks = jax.random.split(key, 7)
    s = 0.02
    f32 = jnp.float32
    return {
        "in_proj_w": jax.random.normal(ks[0], (3 * d_model, d_model), f32) * s,
        "in_proj_b": jax.random.normal(ks[1], (3 * d_model,), f32) * s,
        "out_proj_w": jax.random.normal(ks[2], (d_model, d_model), f32) * s,
        "out_proj_b": jnp.zeros((d_model,), f32),
        "lin1_w": jax.random.normal(ks[3], (dim_ff, d_model), f32) * s,
        "lin1_b": jax.random.normal(ks[4], (dim_ff,), f32) * s,
        "lin2_w": jax.random.normal(ks[5], (d_model, dim_ff), f32) * s,
        "lin2_b": jax.random.normal(ks[6], (d_model,), f32) * s,
        "norm1_w": jnp.ones((d_model,), f32),
        "norm1_b": jnp.zeros((d_model,), f32),
        "norm2_w": jnp.ones((d_model,), f32),
        "norm2_b": jnp.zeros((d_model,), f32),
        "final_norm_w": jnp.ones((d_model,), f32),
        "final_norm_b": jnp.zeros((d_model,), f32),
    }


# ------------------------- pure-JAX reference check ------------------------

def reference_forward(src, params, n_head, offset=0):
    S, B, D = src.shape
    hp = jax.lax.Precision.HIGHEST
    pe = positional_encoding(S, D, offset)
    x = jnp.transpose(src + pe[:, None, :], (1, 0, 2))           # (B, S, D)

    def ln(v, w, b):
        mu = v.mean(-1, keepdims=True)
        var = ((v - mu) ** 2).mean(-1, keepdims=True)
        return (v - mu) / jnp.sqrt(var + 1e-5) * w + b

    qkv = jnp.einsum('bsd,ed->bse', x, params["in_proj_w"],
                     precision=hp) + params["in_proj_b"]
    q, k, v = jnp.split(qkv, 3, axis=-1)
    dh = D // n_head
    q = q.reshape(B, S, n_head, dh)
    k = k.reshape(B, S, n_head, dh)
    v = v.reshape(B, S, n_head, dh)
    sc = jnp.einsum('bqhd,bkhd->bhqk', q, k, precision=hp) / math.sqrt(dh)
    p = jax.nn.softmax(sc, axis=-1)
    ao = jnp.einsum('bhqk,bkhd->bqhd', p, v, precision=hp).reshape(B, S, D)
    ao = jnp.einsum('bsd,ed->bse', ao, params["out_proj_w"],
                    precision=hp) + params["out_proj_b"]
    x = ln(x + ao, params["norm1_w"], params["norm1_b"])
    h1 = jax.nn.relu(jnp.einsum('bsd,fd->bsf', x, params["lin1_w"],
                                precision=hp) + params["lin1_b"])
    ff = jnp.einsum('bsf,df->bsd', h1, params["lin2_w"],
                    precision=hp) + params["lin2_b"]
    x = ln(x + ff, params["norm2_w"], params["norm2_b"])
    x = ln(x, params["final_norm_w"], params["final_norm_b"])
    return jnp.transpose(x, (1, 0, 2))


# ----------------------------------- main ----------------------------------

if __name__ == "__main__":
    S, B, D = 8, 2, 32          # seq, batch, d_model
    N_HEAD, DIM_FF = 4, 64

    key = jax.random.PRNGKey(0)
    k_src, k_par = jax.random.split(key)
    src = jax.random.normal(k_src, (S, B, D), jnp.float32)
    params = init_params(k_par, D, DIM_FF)

    out = trans_encoder_forward(src, params, N_HEAD, offset=0)
    out = jax.block_until_ready(out)

    ref = jax.block_until_ready(reference_forward(src, params, N_HEAD))
    assert out.shape == (S, B, D)
    max_err = float(jnp.max(jnp.abs(out - ref)))
    assert jnp.allclose(out, ref, atol=5e-3, rtol=5e-3), max_err

    print("KERNEL_OK")
</pallas_src>

<mosaic_0001>
module attributes {stable_mosaic.version = 11 : i64} {
  func.func @_encoder_kernel(%arg0: i32, %arg1: memref<1x8x32xf32, #tpu.memory_space<vmem>>, %arg2: memref<8x32xf32, #tpu.memory_space<vmem>>, %arg3: memref<32x96xf32, #tpu.memory_space<vmem>>, %arg4: memref<1x96xf32, #tpu.memory_space<vmem>>, %arg5: memref<32x32xf32, #tpu.memory_space<vmem>>, %arg6: memref<1x32xf32, #tpu.memory_space<vmem>>, %arg7: memref<1x32xf32, #tpu.memory_space<vmem>>, %arg8: memref<1x32xf32, #tpu.memory_space<vmem>>, %arg9: memref<32x64xf32, #tpu.memory_space<vmem>>, %arg10: memref<1x64xf32, #tpu.memory_space<vmem>>, %arg11: memref<64x32xf32, #tpu.memory_space<vmem>>, %arg12: memref<1x32xf32, #tpu.memory_space<vmem>>, %arg13: memref<1x32xf32, #tpu.memory_space<vmem>>, %arg14: memref<1x32xf32, #tpu.memory_space<vmem>>, %arg15: memref<1x32xf32, #tpu.memory_space<vmem>>, %arg16: memref<1x32xf32, #tpu.memory_space<vmem>>, %arg17: memref<1x8x32xf32, #tpu.memory_space<vmem>>) attributes {dimension_semantics = [#tpu.dimension_semantics<parallel>], iteration_bounds = array<i64: 2>, scalar_prefetch = 0 : i64, scratch_operands = 0 : i64, tpu.core_type = #tpu.core_type<tc>, window_params = [{transform_indices = @transform_0, window_bounds = array<i64: 1, 8, 32>}, {pipeline_mode = #tpu.pipeline_mode<synchronous>, transform_indices = @transform_1, window_bounds = array<i64: 8, 32>}, {pipeline_mode = #tpu.pipeline_mode<synchronous>, transform_indices = @transform_2, window_bounds = array<i64: 32, 96>}, {pipeline_mode = #tpu.pipeline_mode<synchronous>, transform_indices = @transform_3, window_bounds = array<i64: 1, 96>}, {pipeline_mode = #tpu.pipeline_mode<synchronous>, transform_indices = @transform_4, window_bounds = array<i64: 32, 32>}, {pipeline_mode = #tpu.pipeline_mode<synchronous>, transform_indices = @transform_5, window_bounds = array<i64: 1, 32>}, {pipeline_mode = #tpu.pipeline_mode<synchronous>, transform_indices = @transform_6, window_bounds = array<i64: 1, 32>}, {pipeline_mode = #tpu.pipeline_mode<synchronous>, transform_indices = @transform_7, window_bounds = array<i64: 1, 32>}, {pipeline_mode = #tpu.pipeline_mode<synchronous>, transform_indices = @transform_8, window_bounds = array<i64: 32, 64>}, {pipeline_mode = #tpu.pipeline_mode<synchronous>, transform_indices = @transform_9, window_bounds = array<i64: 1, 64>}, {pipeline_mode = #tpu.pipeline_mode<synchronous>, transform_indices = @transform_10, window_bounds = array<i64: 64, 32>}, {pipeline_mode = #tpu.pipeline_mode<synchronous>, transform_indices = @transform_11, window_bounds = array<i64: 1, 32>}, {pipeline_mode = #tpu.pipeline_mode<synchronous>, transform_indices = @transform_12, window_bounds = array<i64: 1, 32>}, {pipeline_mode = #tpu.pipeline_mode<synchronous>, transform_indices = @transform_13, window_bounds = array<i64: 1, 32>}, {pipeline_mode = #tpu.pipeline_mode<synchronous>, transform_indices = @transform_14, window_bounds = array<i64: 1, 32>}, {pipeline_mode = #tpu.pipeline_mode<synchronous>, transform_indices = @transform_15, window_bounds = array<i64: 1, 32>}, {transform_indices = @transform_16, window_bounds = array<i64: 1, 8, 32>}]} {
    %c0 = arith.constant 0 : index
    %c0_0 = arith.constant 0 : index
    %c0_1 = arith.constant 0 : index
    %0 = vector.load %arg1[%c0, %c0_0, %c0_1] : memref<1x8x32xf32, #tpu.memory_space<vmem>>, vector<1x8x32xf32>
    %1 = vector.shape_cast %0 : vector<1x8x32xf32> to vector<8x32xf32>
    %c0_2 = arith.constant 0 : index
    %c0_3 = arith.constant 0 : index
    %2 = vector.load %arg2[%c0_2, %c0_3] : memref<8x32xf32, #tpu.memory_space<vmem>>, vector<8x32xf32>
    %3 = arith.addf %1, %2 : vector<8x32xf32>
    %c0_4 = arith.constant 0 : index
    %c0_5 = arith.constant 0 : index
    %4 = vector.load %arg3[%c0_4, %c0_5] : memref<32x96xf32, #tpu.memory_space<vmem>>, vector<32x96xf32>
    %cst = arith.constant dense<0.000000e+00> : vector<8x96xf32>
    %5 = tpu.matmul %3, %4, %cst {dimension_numbers = #tpu.dot_dimension_numbers<[1], [0], [0], [1], [0, 0, 1, 1], [], []>} : vector<8x32xf32>, vector<32x96xf32>, vector<8x96xf32> -> vector<8x96xf32>
    %c0_6 = arith.constant 0 : index
    %c0_7 = arith.constant 0 : index
    %6 = vector.load %arg4[%c0_6, %c0_7] : memref<1x96xf32, #tpu.memory_space<vmem>>, vector<1x96xf32>
    %7 = vector.broadcast %6 : vector<1x96xf32> to vector<8x96xf32>
    %8 = arith.addf %5, %7 : vector<8x96xf32>
    %9 = vector.extract_strided_slice %8 {offsets = [0, 0], sizes = [8, 8], strides = [1, 1]} : vector<8x96xf32> to vector<8x8xf32>
    %10 = vector.extract_strided_slice %8 {offsets = [0, 8], sizes = [8, 8], strides = [1, 1]} : vector<8x96xf32> to vector<8x8xf32>
    %11 = vector.extract_strided_slice %8 {offsets = [0, 16], sizes = [8, 8], strides = [1, 1]} : vector<8x96xf32> to vector<8x8xf32>
    %12 = vector.extract_strided_slice %8 {offsets = [0, 24], sizes = [8, 8], strides = [1, 1]} : vector<8x96xf32> to vector<8x8xf32>
    %13 = vector.shape_cast %9 : vector<8x8xf32> to vector<1x8x8xf32>
    %14 = vector.shape_cast %10 : vector<8x8xf32> to vector<1x8x8xf32>
    %15 = vector.shape_cast %11 : vector<8x8xf32> to vector<1x8x8xf32>
    %16 = vector.shape_cast %12 : vector<8x8xf32> to vector<1x8x8xf32>
    %17 = tpu.concatenate %13, %14, %15, %16 in 0 : vector<1x8x8xf32>, vector<1x8x8xf32>, vector<1x8x8xf32>, vector<1x8x8xf32> -> vector<4x8x8xf32>
    %18 = vector.extract_strided_slice %8 {offsets = [0, 32], sizes = [8, 8], strides = [1, 1]} : vector<8x96xf32> to vector<8x8xf32>
    %19 = vector.extract_strided_slice %8 {offsets = [0, 40], sizes = [8, 8], strides = [1, 1]} : vector<8x96xf32> to vector<8x8xf32>
    %20 = vector.extract_strided_slice %8 {offsets = [0, 48], sizes = [8, 8], strides = [1, 1]} : vector<8x96xf32> to vector<8x8xf32>
    %21 = vector.extract_strided_slice %8 {offsets = [0, 56], sizes = [8, 8], strides = [1, 1]} : vector<8x96xf32> to vector<8x8xf32>
    %22 = vector.shape_cast %18 : vector<8x8xf32> to vector<1x8x8xf32>
    %23 = vector.shape_cast %19 : vector<8x8xf32> to vector<1x8x8xf32>
    %24 = vector.shape_cast %20 : vector<8x8xf32> to vector<1x8x8xf32>
    %25 = vector.shape_cast %21 : vector<8x8xf32> to vector<1x8x8xf32>
    %26 = tpu.concatenate %22, %23, %24, %25 in 0 : vector<1x8x8xf32>, vector<1x8x8xf32>, vector<1x8x8xf32>, vector<1x8x8xf32> -> vector<4x8x8xf32>
    %27 = vector.extract_strided_slice %8 {offsets = [0, 64], sizes = [8, 8], strides = [1, 1]} : vector<8x96xf32> to vector<8x8xf32>
    %28 = vector.extract_strided_slice %8 {offsets = [0, 72], sizes = [8, 8], strides = [1, 1]} : vector<8x96xf32> to vector<8x8xf32>
    %29 = vector.extract_strided_slice %8 {offsets = [0, 80], sizes = [8, 8], strides = [1, 1]} : vector<8x96xf32> to vector<8x8xf32>
    %30 = vector.extract_strided_slice %8 {offsets = [0, 88], sizes = [8, 8], strides = [1, 1]} : vector<8x96xf32> to vector<8x8xf32>
    %31 = vector.shape_cast %27 : vector<8x8xf32> to vector<1x8x8xf32>
    %32 = vector.shape_cast %28 : vector<8x8xf32> to vector<1x8x8xf32>
    %33 = vector.shape_cast %29 : vector<8x8xf32> to vector<1x8x8xf32>
    %34 = vector.shape_cast %30 : vector<8x8xf32> to vector<1x8x8xf32>
    %35 = tpu.concatenate %31, %32, %33, %34 in 0 : vector<1x8x8xf32>, vector<1x8x8xf32>, vector<1x8x8xf32>, vector<1x8x8xf32> -> vector<4x8x8xf32>
    "tpu.trace_start"() <{level = 10 : i32, message = "hqd,hkd->hqk"}> : () -> ()
    %cst_8 = arith.constant dense<0.000000e+00> : vector<4x8x8xf32>
    %36 = tpu.matmul %17, %26, %cst_8 {dimension_numbers = #tpu.dot_dimension_numbers<[2], [2], [1], [1], [0, 0, 0, 1, 1, 1], [0], [0]>} : vector<4x8x8xf32>, vector<4x8x8xf32>, vector<4x8x8xf32> -> vector<4x8x8xf32>
    "tpu.trace_stop"() : () -> ()
    %cst_9 = arith.constant dense<0xFF800000> : vector<4x8xf32>
    %37 = vector.multi_reduction <maximumf>, %36, %cst_9 [2] : vector<4x8x8xf32> to vector<4x8xf32>
    %38 = vector.shape_cast %37 : vector<4x8xf32> to vector<4x8x1xf32>
    %39 = vector.broadcast %38 : vector<4x8x1xf32> to vector<4x8x8xf32>
    %40 = arith.subf %36, %39 : vector<4x8x8xf32>
    %41 = math.exp %40 : vector<4x8x8xf32>
    %cst_10 = arith.constant dense<0.000000e+00> : vector<4x8xf32>
    %42 = vector.multi_reduction <add>, %41, %cst_10 [2] : vector<4x8x8xf32> to vector<4x8xf32>
    %43 = vector.shape_cast %42 : vector<4x8xf32> to vector<4x8x1xf32>
    %44 = tpu.reciprocal %43 {approx = true} : vector<4x8x1xf32> -> vector<4x8x1xf32>
    %45 = vector.broadcast %44 : vector<4x8x1xf32> to vector<4x8x8xf32>
    %46 = arith.mulf %41, %45 : vector<4x8x8xf32>
    "tpu.trace_start"() <{level = 10 : i32, message = "hqk,hkd->hqd"}> : () -> ()
    %cst_11 = arith.constant dense<0.000000e+00> : vector<4x8x8xf32>
    %47 = tpu.matmul %46, %35, %cst_11 {dimension_numbers = #tpu.dot_dimension_numbers<[2], [1], [1], [2], [0, 0, 0, 1, 1, 2], [0], [0]>} : vector<4x8x8xf32>, vector<4x8x8xf32>, vector<4x8x8xf32> -> vector<4x8x8xf32>
    "tpu.trace_stop"() : () -> ()
    %48 = vector.extract_strided_slice %47 {offsets = [0, 0, 0], sizes = [1, 8, 8], strides = [1, 1, 1]} : vector<4x8x8xf32> to vector<1x8x8xf32>
    %49 = vector.shape_cast %48 : vector<1x8x8xf32> to vector<8x8xf32>
    %50 = vector.extract_strided_slice %47 {offsets = [1, 0, 0], sizes = [1, 8, 8], strides = [1, 1, 1]} : vector<4x8x8xf32> to vector<1x8x8xf32>
    %51 = vector.shape_cast %50 : vector<1x8x8xf32> to vector<8x8xf32>
    %52 = vector.extract_strided_slice %47 {offsets = [2, 0, 0], sizes = [1, 8, 8], strides = [1, 1, 1]} : vector<4x8x8xf32> to vector<1x8x8xf32>
    %53 = vector.shape_cast %52 : vector<1x8x8xf32> to vector<8x8xf32>
    %54 = vector.extract_strided_slice %47 {offsets = [3, 0, 0], sizes = [1, 8, 8], strides = [1, 1, 1]} : vector<4x8x8xf32> to vector<1x8x8xf32>
    %55 = vector.shape_cast %54 : vector<1x8x8xf32> to vector<8x8xf32>
    %56 = tpu.concatenate %49, %51, %53, %55 in 1 : vector<8x8xf32>, vector<8x8xf32>, vector<8x8xf32>, vector<8x8xf32> -> vector<8x32xf32>
    %c0_12 = arith.constant 0 : index
    %c0_13 = arith.constant 0 : index
    %57 = vector.load %arg5[%c0_12, %c0_13] : memref<32x32xf32, #tpu.memory_space<vmem>>, vector<32x32xf32>
    %cst_14 = arith.constant dense<0.000000e+00> : vector<8x32xf32>
    %58 = tpu.matmul %56, %57, %cst_14 {dimension_numbers = #tpu.dot_dimension_numbers<[1], [0], [0], [1], [0, 0, 1, 1], [], []>} : vector<8x32xf32>, vector<32x32xf32>, vector<8x32xf32> -> vector<8x32xf32>
    %c0_15 = arith.constant 0 : index
    %c0_16 = arith.constant 0 : index
    %59 = vector.load %arg6[%c0_15, %c0_16] : memref<1x32xf32, #tpu.memory_space<vmem>>, vector<1x32xf32>
    %60 = vector.broadcast %59 : vector<1x32xf32> to vector<8x32xf32>
    %61 = arith.addf %58, %60 : vector<8x32xf32>
    %62 = arith.addf %3, %61 : vector<8x32xf32>
    %c0_17 = arith.constant 0 : index
    %c0_18 = arith.constant 0 : index
    %63 = vector.load %arg7[%c0_17, %c0_18] : memref<1x32xf32, #tpu.memory_space<vmem>>, vector<1x32xf32>
    %c0_19 = arith.constant 0 : index
    %c0_20 = arith.constant 0 : index
    %64 = vector.load %arg8[%c0_19, %c0_20] : memref<1x32xf32, #tpu.memory_space<vmem>>, vector<1x32xf32>
    %cst_21 = arith.constant dense<0.000000e+00> : vector<8xf32>
    %65 = vector.multi_reduction <add>, %62, %cst_21 [1] : vector<8x32xf32> to vector<8xf32>
    %66 = vector.shape_cast %65 : vector<8xf32> to vector<8x1xf32>
    %cst_22 = arith.constant 3.200000e+01 : f32
    %67 = vector.broadcast %cst_22 : f32 to vector<8x1xf32>
    %68 = arith.divf %66, %67 : vector<8x1xf32>
    %69 = vector.broadcast %68 : vector<8x1xf32> to vector<8x32xf32>
    %70 = arith.subf %62, %69 : vector<8x32xf32>
    %71 = arith.mulf %70, %70 : vector<8x32xf32>
    %cst_23 = arith.constant dense<0.000000e+00> : vector<8xf32>
    %72 = vector.multi_reduction <add>, %71, %cst_23 [1] : vector<8x32xf32> to vector<8xf32>
    %73 = vector.shape_cast %72 : vector<8xf32> to vector<8x1xf32>
    %cst_24 = arith.constant 3.200000e+01 : f32
    %74 = vector.broadcast %cst_24 : f32 to vector<8x1xf32>
    %75 = arith.divf %73, %74 : vector<8x1xf32>
    %76 = vector.broadcast %68 : vector<8x1xf32> to vector<8x32xf32>
    %77 = arith.subf %62, %76 : vector<8x32xf32>
    %cst_25 = arith.constant 9.99999974E-6 : f32
    %78 = vector.broadcast %cst_25 : f32 to vector<8x1xf32>
    %79 = arith.addf %75, %78 : vector<8x1xf32>
    %80 = math.rsqrt %79 : vector<8x1xf32>
    %81 = vector.broadcast %80 : vector<8x1xf32> to vector<8x32xf32>
    %82 = arith.mulf %77, %81 : vector<8x32xf32>
    %83 = vector.broadcast %63 : vector<1x32xf32> to vector<8x32xf32>
    %84 = arith.mulf %82, %83 : vector<8x32xf32>
    %85 = vector.broadcast %64 : vector<1x32xf32> to vector<8x32xf32>
    %86 = arith.addf %84, %85 : vector<8x32xf32>
    %c0_26 = arith.constant 0 : index
    %c0_27 = arith.constant 0 : index
    %87 = vector.load %arg9[%c0_26, %c0_27] : memref<32x64xf32, #tpu.memory_space<vmem>>, vector<32x64xf32>
    %cst_28 = arith.constant dense<0.000000e+00> : vector<8x64xf32>
    %88 = tpu.matmul %86, %87, %cst_28 {dimension_numbers = #tpu.dot_dimension_numbers<[1], [0], [0], [1], [0, 0, 1, 1], [], []>} : vector<8x32xf32>, vector<32x64xf32>, vector<8x64xf32> -> vector<8x64xf32>
    %c0_29 = arith.constant 0 : index
    %c0_30 = arith.constant 0 : index
    %89 = vector.load %arg10[%c0_29, %c0_30] : memref<1x64xf32, #tpu.memory_space<vmem>>, vector<1x64xf32>
    %90 = vector.broadcast %89 : vector<1x64xf32> to vector<8x64xf32>
    %91 = arith.addf %88, %90 : vector<8x64xf32>
    %cst_31 = arith.constant 0.000000e+00 : f32
    %92 = vector.broadcast %cst_31 : f32 to vector<8x64xf32>
    %93 = arith.maximumf %91, %92 : vector<8x64xf32>
    %c0_32 = arith.constant 0 : index
    %c0_33 = arith.constant 0 : index
    %94 = vector.load %arg11[%c0_32, %c0_33] : memref<64x32xf32, #tpu.memory_space<vmem>>, vector<64x32xf32>
    %cst_34 = arith.constant dense<0.000000e+00> : vector<8x32xf32>
    %95 = tpu.matmul %93, %94, %cst_34 {dimension_numbers = #tpu.dot_dimension_numbers<[1], [0], [0], [1], [0, 0, 1, 1], [], []>} : vector<8x64xf32>, vector<64x32xf32>, vector<8x32xf32> -> vector<8x32xf32>
    %c0_35 = arith.constant 0 : index
    %c0_36 = arith.constant 0 : index
    %96 = vector.load %arg12[%c0_35, %c0_36] : memref<1x32xf32, #tpu.memory_space<vmem>>, vector<1x32xf32>
    %97 = vector.broadcast %96 : vector<1x32xf32> to vector<8x32xf32>
    %98 = arith.addf %95, %97 : vector<8x32xf32>
    %99 = arith.addf %86, %98 : vector<8x32xf32>
    %c0_37 = arith.constant 0 : index
    %c0_38 = arith.constant 0 : index
    %100 = vector.load %arg13[%c0_37, %c0_38] : memref<1x32xf32, #tpu.memory_space<vmem>>, vector<1x32xf32>
    %c0_39 = arith.constant 0 : index
    %c0_40 = arith.constant 0 : index
    %101 = vector.load %arg14[%c0_39, %c0_40] : memref<1x32xf32, #tpu.memory_space<vmem>>, vector<1x32xf32>
    %cst_41 = arith.constant dense<0.000000e+00> : vector<8xf32>
    %102 = vector.multi_reduction <add>, %99, %cst_41 [1] : vector<8x32xf32> to vector<8xf32>
    %103 = vector.shape_cast %102 : vector<8xf32> to vector<8x1xf32>
    %cst_42 = arith.constant 3.200000e+01 : f32
    %104 = vector.broadcast %cst_42 : f32 to vector<8x1xf32>
    %105 = arith.divf %103, %104 : vector<8x1xf32>
    %106 = vector.broadcast %105 : vector<8x1xf32> to vector<8x32xf32>
    %107 = arith.subf %99, %106 : vector<8x32xf32>
    %108 = arith.mulf %107, %107 : vector<8x32xf32>
    %cst_43 = arith.constant dense<0.000000e+00> : vector<8xf32>
    %109 = vector.multi_reduction <add>, %108, %cst_43 [1] : vector<8x32xf32> to vector<8xf32>
    %110 = vector.shape_cast %109 : vector<8xf32> to vector<8x1xf32>
    %cst_44 = arith.constant 3.200000e+01 : f32
    %111 = vector.broadcast %cst_44 : f32 to vector<8x1xf32>
    %112 = arith.divf %110, %111 : vector<8x1xf32>
    %113 = vector.broadcast %105 : vector<8x1xf32> to vector<8x32xf32>
    %114 = arith.subf %99, %113 : vector<8x32xf32>
    %cst_45 = arith.constant 9.99999974E-6 : f32
    %115 = vector.broadcast %cst_45 : f32 to vector<8x1xf32>
    %116 = arith.addf %112, %115 : vector<8x1xf32>
    %117 = math.rsqrt %116 : vector<8x1xf32>
    %118 = vector.broadcast %117 : vector<8x1xf32> to vector<8x32xf32>
    %119 = arith.mulf %114, %118 : vector<8x32xf32>
    %120 = vector.broadcast %100 : vector<1x32xf32> to vector<8x32xf32>
    %121 = arith.mulf %119, %120 : vector<8x32xf32>
    %122 = vector.broadcast %101 : vector<1x32xf32> to vector<8x32xf32>
    %123 = arith.addf %121, %122 : vector<8x32xf32>
    %c0_46 = arith.constant 0 : index
    %c0_47 = arith.constant 0 : index
    %124 = vector.load %arg15[%c0_46, %c0_47] : memref<1x32xf32, #tpu.memory_space<vmem>>, vector<1x32xf32>
    %c0_48 = arith.constant 0 : index
    %c0_49 = arith.constant 0 : index
    %125 = vector.load %arg16[%c0_48, %c0_49] : memref<1x32xf32, #tpu.memory_space<vmem>>, vector<1x32xf32>
    %cst_50 = arith.constant dense<0.000000e+00> : vector<8xf32>
    %126 = vector.multi_reduction <add>, %123, %cst_50 [1] : vector<8x32xf32> to vector<8xf32>
    %127 = vector.shape_cast %126 : vector<8xf32> to vector<8x1xf32>
    %cst_51 = arith.constant 3.200000e+01 : f32
    %128 = vector.broadcast %cst_51 : f32 to vector<8x1xf32>
    %129 = arith.divf %127, %128 : vector<8x1xf32>
    %130 = vector.broadcast %129 : vector<8x1xf32> to vector<8x32xf32>
    %131 = arith.subf %123, %130 : vector<8x32xf32>
    %132 = arith.mulf %131, %131 : vector<8x32xf32>
    %cst_52 = arith.constant dense<0.000000e+00> : vector<8xf32>
    %133 = vector.multi_reduction <add>, %132, %cst_52 [1] : vector<8x32xf32> to vector<8xf32>
    %134 = vector.shape_cast %133 : vector<8xf32> to vector<8x1xf32>
    %cst_53 = arith.constant 3.200000e+01 : f32
    %135 = vector.broadcast %cst_53 : f32 to vector<8x1xf32>
    %136 = arith.divf %134, %135 : vector<8x1xf32>
    %137 = vector.broadcast %129 : vector<8x1xf32> to vector<8x32xf32>
    %138 = arith.subf %123, %137 : vector<8x32xf32>
    %cst_54 = arith.constant 9.99999974E-6 : f32
    %139 = vector.broadcast %cst_54 : f32 to vector<8x1xf32>
    %140 = arith.addf %136, %139 : vector<8x1xf32>
    %141 = math.rsqrt %140 : vector<8x1xf32>
    %142 = vector.broadcast %141 : vector<8x1xf32> to vector<8x32xf32>
    %143 = arith.mulf %138, %142 : vector<8x32xf32>
    %144 = vector.broadcast %124 : vector<1x32xf32> to vector<8x32xf32>
    %145 = arith.mulf %143, %144 : vector<8x32xf32>
    %146 = vector.broadcast %125 : vector<1x32xf32> to vector<8x32xf32>
    %147 = arith.addf %145, %146 : vector<8x32xf32>
    %c0_55 = arith.constant 0 : index
    %c0_56 = arith.constant 0 : index
    %c0_57 = arith.constant 0 : index
    %148 = vector.load %arg17[%c0_55, %c0_56, %c0_57] : memref<1x8x32xf32, #tpu.memory_space<vmem>>, vector<1x8x32xf32>
    %149 = vector.shape_cast %148 : vector<1x8x32xf32> to vector<8x32xf32>
    %150 = vector.shape_cast %147 : vector<8x32xf32> to vector<1x8x32xf32>
    tpu.vector_store %arg17[%c0_55, %c0_56, %c0_57], %150 {strides = array<i32>} : memref<1x8x32xf32, #tpu.memory_space<vmem>>, vector<1x8x32xf32>,
    return
  }
  func.func @transform_0(%arg0: i32) -> (i32, i32, i32) {
    %c0_i32 = arith.constant 0 : i32
    %c0_i32_0 = arith.constant 0 : i32
    %c0_i32_1 = arith.constant 0 : i32
    return %arg0, %c0_i32, %c0_i32_0 : i32, i32, i32
  }
  func.func @transform_1(%arg0: i32) -> (i32, i32) {
    %c0_i32 = arith.constant 0 : i32
    %c0_i32_0 = arith.constant 0 : i32
    %c0_i32_1 = arith.constant 0 : i32
    return %c0_i32, %c0_i32_0 : i32, i32
  }
  func.func @transform_2(%arg0: i32) -> (i32, i32) {
    %c0_i32 = arith.constant 0 : i32
    %c0_i32_0 = arith.constant 0 : i32
    %c0_i32_1 = arith.constant 0 : i32
    return %c0_i32, %c0_i32_0 : i32, i32
  }
  func.func @transform_3(%arg0: i32) -> (i32, i32) {
    %c0_i32 = arith.constant 0 : i32
    %c0_i32_0 = arith.constant 0 : i32
    %c0_i32_1 = arith.constant 0 : i32
    return %c0_i32, %c0_i32_0 : i32, i32
  }
  func.func @transform_4(%arg0: i32) -> (i32, i32) {
    %c0_i32 = arith.constant 0 : i32
    %c0_i32_0 = arith.constant 0 : i32
    %c0_i32_1 = arith.constant 0 : i32
    return %c0_i32, %c0_i32_0 : i32, i32
  }
  func.func @transform_5(%arg0: i32) -> (i32, i32) {
    %c0_i32 = arith.constant 0 : i32
    %c0_i32_0 = arith.constant 0 : i32
    %c0_i32_1 = arith.constant 0 : i32
    return %c0_i32, %c0_i32_0 : i32, i32
  }
  func.func @transform_6(%arg0: i32) -> (i32, i32) {
    %c0_i32 = arith.constant 0 : i32
    %c0_i32_0 = arith.constant 0 : i32
    %c0_i32_1 = arith.constant 0 : i32
    return %c0_i32, %c0_i32_0 : i32, i32
  }
  func.func @transform_7(%arg0: i32) -> (i32, i32) {
    %c0_i32 = arith.constant 0 : i32
    %c0_i32_0 = arith.constant 0 : i32
    %c0_i32_1 = arith.constant 0 : i32
    return %c0_i32, %c0_i32_0 : i32, i32
  }
  func.func @transform_8(%arg0: i32) -> (i32, i32) {
    %c0_i32 = arith.constant 0 : i32
    %c0_i32_0 = arith.constant 0 : i32
    %c0_i32_1 = arith.constant 0 : i32
    return %c0_i32, %c0_i32_0 : i32, i32
  }
  func.func @transform_9(%arg0: i32) -> (i32, i32) {
    %c0_i32 = arith.constant 0 : i32
    %c0_i32_0 = arith.constant 0 : i32
    %c0_i32_1 = arith.constant 0 : i32
    return %c0_i32, %c0_i32_0 : i32, i32
  }
  func.func @transform_10(%arg0: i32) -> (i32, i32) {
    %c0_i32 = arith.constant 0 : i32
    %c0_i32_0 = arith.constant 0 : i32
    %c0_i32_1 = arith.constant 0 : i32
    return %c0_i32, %c0_i32_0 : i32, i32
  }
  func.func @transform_11(%arg0: i32) -> (i32, i32) {
    %c0_i32 = arith.constant 0 : i32
    %c0_i32_0 = arith.constant 0 : i32
    %c0_i32_1 = arith.constant 0 : i32
    return %c0_i32, %c0_i32_0 : i32, i32
  }
  func.func @transform_12(%arg0: i32) -> (i32, i32) {
    %c0_i32 = arith.constant 0 : i32
    %c0_i32_0 = arith.constant 0 : i32
    %c0_i32_1 = arith.constant 0 : i32
    return %c0_i32, %c0_i32_0 : i32, i32
  }
  func.func @transform_13(%arg0: i32) -> (i32, i32) {
    %c0_i32 = arith.constant 0 : i32
    %c0_i32_0 = arith.constant 0 : i32
    %c0_i32_1 = arith.constant 0 : i32
    return %c0_i32, %c0_i32_0 : i32, i32
  }
  func.func @transform_14(%arg0: i32) -> (i32, i32) {
    %c0_i32 = arith.constant 0 : i32
    %c0_i32_0 = arith.constant 0 : i32
    %c0_i32_1 = arith.constant 0 : i32
    return %c0_i32, %c0_i32_0 : i32, i32
  }
  func.func @transform_15(%arg0: i32) -> (i32, i32) {
    %c0_i32 = arith.constant 0 : i32
    %c0_i32_0 = arith.constant 0 : i32
    %c0_i32_1 = arith.constant 0 : i32
    return %c0_i32, %c0_i32_0 : i32, i32
  }
  func.func @transform_16(%arg0: i32) -> (i32, i32, i32) {
    %c0_i32 = arith.constant 0 : i32
    %c0_i32_0 = arith.constant 0 : i32
    %c0_i32_1 = arith.constant 0 : i32
    return %arg0, %c0_i32, %c0_i32_0 : i32, i32, i32
  }
}

</mosaic_0001>

<bundles_post_ra>
// kernel: tpu_custom_call.1
= control target key start
LH: loop header
LB: loop body
LE: loop exit
PB: predicated region body
PF: predicated region fallthrough
CT: control target
= control target key end

     0   :  { %s1817_s0 = inlined_call_operand.hbm [shape: f32[2,8,32], index: 0, kind: input, shape index: {}]   ;;  %s1818_s1 = inlined_call_operand.hbm [shape: f32[8,32], index: 1, kind: input, shape index: {}]   ;;  %s1819_s2 = inlined_call_operand.vmem [shape: f32[32,96], index: 2, kind: input, shape index: {}]   ;;  %s1820_s3 = inlined_call_operand.vmem [shape: f32[1,96], index: 3, kind: input, shape index: {}]   ;;  %s1821_s4 = inlined_call_operand.vmem [shape: f32[32,32], index: 4, kind: input, shape index: {}]   ;;  %s1822_s5 = inlined_call_operand.vmem [shape: f32[1,32], index: 5, kind: input, shape index: {}]   ;;  %s1823_s6 = inlined_call_operand.vmem [shape: f32[1,32], index: 6, kind: input, shape index: {}]   ;;  %s1824_s7 = inlined_call_operand.vmem [shape: f32[1,32], index: 7, kind: input, shape index: {}]   ;;  %s1825_s8 = inlined_call_operand.vmem [shape: f32[32,64], index: 8, kind: input, shape index: {}]   ;;  %s1826_s9 = inlined_call_operand.vmem [shape: f32[1,64], index: 9, kind: input, shape index: {}]   ;;  %s1827_s10 = inlined_call_operand.vmem [shape: f32[64,32], index: 10, kind: input, shape index: {}]   ;;  %s1828_s11 = inlined_call_operand.vmem [shape: f32[1,32], index: 11, kind: input, shape index: {}]   ;;  %s1829_s12 = inlined_call_operand.vmem [shape: f32[1,32], index: 12, kind: input, shape index: {}]   ;;  %s1830_s13 = inlined_call_operand.vmem [shape: f32[1,32], index: 13, kind: input, shape index: {}]   ;;  %s1831_s14 = inlined_call_operand.vmem [shape: f32[1,32], index: 14, kind: input, shape index: {}]   ;;  %s1832_s15 = inlined_call_operand.vmem [shape: f32[1,32], index: 15, kind: input, shape index: {}]   ;;  %s1833_s16 = inlined_call_operand.hbm [shape: f32[2,8,32], index: 16, kind: output, shape index: {}]  }
   0x1   :  { %1843 = sst [smem:[#allocation17_spill]] %s1817_s0 }
   0x2   :  { %1844 = sst [smem:[#allocation18_spill]] %s1818_s1 }
   0x3   :  { %1845 = sst [smem:[#allocation19_spill]] %s1819_s2 }
   0x4   :  { %1846 = sst [smem:[#allocation20_spill]] %s1831_s14 }
   0x5   :  { %1847 = sst [smem:[#allocation21_spill]] %s1832_s15 }
   0x6   :  { %1848 = sst [smem:[#allocation22_spill]] %s1833_s16 }
   0x7   :  { %21 = vsyncpa [#allocation3], 0 }
   0x8   :  { %23 = vsyncpa [#allocation3 + $0x1], 0 }
   0x9   :  { %24 = vsyncpa [#allocation6], 0 }
   0xa   :  { %25 = vsyncpa [#allocation4], 0 }
   0xb   :  { %27 = vsyncpa [#allocation4 + $0x1], 0  ;;  %s1529_s21 = smov 0   ;;  %s1531_s22 = smov 0  }
   0xc   :  { %s1533_s23 = smov 0   ;;  %s1535_s24 = smov 0  }
   0xd LB: > { %1849 = sst [smem:[#allocation11_spill]] %s1420_s21  ;;  %s1550_s25 = sadd.s32 4294967295, %s1432_s24   ;;  %s1432_s24 = sphi %s1535_s24, %s1870_s24   ;;  %s1428_s23 = sphi %s1533_s23, %s1872_s23   ;;  %s1424_s22 = sphi %s1531_s22, %s1874_s22   ;;  %s1420_s21 = sphi %s1529_s21, %s1873_s21  }
   0xe   : > { %1850 = sst [smem:[#allocation12_spill]] %s1428_s23  ;;  %s1167_s26 = sadd.s32 4294967294, %s1432_s24  }
   0xf   : > { %p53_p0 = scmp.ne.s32.totalorder %s1424_s22, %s1420_s21  ;;  %p54_p1 = scmp.eq.s32.totalorder %s1550_s25, 0 }
  0x10   : > { %p392_p2 = scmp.eq.s32.totalorder %s1550_s25, 1  ;;  %p398_p3 = scmp.eq.s32.totalorder %s1167_s26, 1 }
  0x11   : > { %p1559_p4 = por %p54_p1, %p53_p0  ;;  %p1168_p5 = scmp.ge.s32.totalorder %s1432_s24, 1 }
  0x12   : > { %p1564_p6 = por %p398_p3, %p53_p0  ;;  %p405_p7 = scmp.lt.s32.totalorder %s1432_s24, 3 }
  0x13   : > { %s1854_s1 = sld [smem:[#allocation18_spill]]  ;;  %s1434_s18 = smov [#allocation5]  }
  0x14   : > { %s1852_s28 = scalar_select %p1564_p6, 1, 0 }
  0x15   : > { %p1572_p8 = pnand %p1168_p5, %p405_p7  ;;  %s419_s19 = sshll.u32 %s1434_s18, 4  ;;  %s420_s19 = int_to_ptr.vmem [resolvable:$true] %s419_s19 }
  0x16   : > { %1853 = sst [smem:[#allocation13_spill]] %s1852_s28  ;;  %s1582_s20 = sadd.s32 1, %s1432_s24  }
  0x17   : > { %p1205_p10 = pneg %p1572_p8  ;;  %1856 = sst [smem:[#allocation14_spill]] %s1582_s20 }
  0x18   : > { %s40_s26 = sadd.s32 1, %s1428_s23  ;;  %s37_s29 = ssub.s32 %s1432_s24, %s1582_s20 }
  0x19   : > { %s417_s0 = sshll.u32 %s1854_s1, 4  ;;  %p1206_p11 = pnand %p1205_p10, %p54_p1  ;;  %s418_s0 = int_to_ptr.hbm [resolvable:$true] %s417_s0 }
  0x1a   : > { %p38_p12 = scmp.eq.s32.totalorder %s37_s29, 0  ;;  %p47_p13 = scmp.ne.s32.totalorder %s1428_s23, %s1424_s22 }
  0x1b   : > { %1208 = dma.hbm_to_vmem [thread:$0]  (!%p1206_p11), %s418_s0, 128, %s420_s19, [#allocation6]  }
  0x1c   : > { %p48_p0 = scmp.eq.s32.totalorder %s1432_s24, 0  ;;  %p1595_p3 = por %p392_p2, %p47_p13 }
  0x1d   : > { %s1591_s30 = scalar_select %p38_p12, %s1428_s23, %s40_s26  }
  0x1e   : > { %s1858_s1 = scalar_select %p1595_p3, 1, 0 }
  0x1f   : > { %1857 = sst [smem:[#allocation15_spill]] %s1591_s30  ;;  %p1218_p5 = scmp.lt.s32.totalorder %s1432_s24, 2 }
  0x20   : > { %1859 = sst [smem:[#allocation16_spill]] %s1858_s1  ;;  %s472_s18 = sand.u32 1, %s1428_s23  }
  0x21   : > { %s1172_s28 = sshll.u32 %s1432_s24, 3  ;;  %p49_p7 = por %p48_p0, %p47_p13 }
  0x22   : > { %s1171_s21 = sshll.u32 %s472_s18, 3  ;;  %s1860_s14 = sld [smem:[#allocation17_spill]] }
  0x23   : > { %s476_s19 = scalar_lea.vmem [#allocation2], %s1171_s21  ;;  %p1605_p10 = pnand %p1218_p5, %p49_p7 }
  0x24   : > { %s484_s29 = sshll.u32 %s476_s19, 4  ;;  %s473_s30 = scalar_lea.sflag [#allocation3], %s472_s18  ;;  %s485_s29 = int_to_ptr.vmem [resolvable:$true] %s484_s29 }
  0x25   : > { %p1336_p11 = pneg %p1605_p10 }
  0x28   : > { %s480_s20 = scalar_lea.hbm %s1860_s14, %s1172_s28  ;;  %s1339_s21 = scalar_lea.hbm %s1860_s14, 16 }
  0x29   : > { %s482_s0 = sshll.u32 %s480_s20, 4  ;;  %s483_s0 = int_to_ptr.hbm [resolvable:$true] %s482_s0 }
  0x2a   : > { %s1332_s1 = sshra.s32 %s483_s0, 4  ;;  %s1333_s1 = int_to_ptr.hbm [resolvable:$true] %s1332_s1 }
  0x2b   : > { %s1334_s23 = scalar_lea.hbm %s1333_s1, 8  ;;  %p1340_p0 = scmp.lt.s32.totalorder %s1333_s1, %s1860_s14 }
  0x2c   : > { %p1335_p2 = scmp.ne.s32.totalorder %s1333_s1, %s1334_s23  ;;  %p1341_p5 = scmp.lt.s32.totalorder %s1339_s21, %s1334_s23 }
  0x2e   : > { %p1337_p12 = pnand %p1336_p11, %p1335_p2  ;;  %p1342_p7 = por %p1341_p5, %p1340_p0 }
  0x30   : > { %p1338_p13 = pneg %p1337_p12 }
  0x32   : > { %p1343_p9 = pnand %p1342_p7, %p1338_p13 }
  0x34   : > { %1346 = shalt.err (!%p1343_p9)
}
  0x35   : > { %1212 = dma.hbm_to_vmem [thread:$0]  (!%p1605_p10), %s483_s0, 128, %s485_s29, %s473_s30  }
  0x36   : > { %493 = sbr.rel (%p1572_p8) target bundleno = 2306 (0x902), region = 84  ;;  %s1622_s18 = sand.u32 (!%p1572_p8), 1, %s1424_s22  }
  0x37   : > { %s1174_s19 = sshll.u32 (!%p1572_p8), %s1622_s18, 3  ;;  %s496_s15 = scalar_lea.sflag (!%p1572_p8), [#allocation3], %s1622_s18 }
  0x38   : > { %s499_s1 = scalar_lea.vmem (!%p1572_p8), [#allocation2], %s1174_s19 }
  0x3b   : > { %1407 = dma.done.wait (%p1559_p4), %s496_s15, 128  }
  0x3c   : > { %1409 = vsyncadd (%p1559_p4), %s496_s15, 4294967168 }
  0x3d   : > { %1411 = dma.done.wait (%p54_p1), [#allocation6], 128  }
  0x3e   : > { %1413 = vsyncadd (%p54_p1), [#allocation6], 4294967168  ;;  %s1862_s2 = sld [smem:[#allocation19_spill]]  ;;  %v554_v3 = vld [vmem:[%s499_s1] sm:$0xff]  ;;  %v555_v4 = vld [vmem:[#allocation5] sm:$0xff]  ;;  %vm565_vm0 = vcmask 261120  }
  0x3f   : > { %v1648_v6 = vadd.f32 %v555_v4, %v554_v3  ;;  %v1268_v7 = vld [vmem:[%s1820_s3] ss:$0 sm:$0xff]  ;;  %s1435_s20 = smov 104   ;;  %s1436_s15 = smov 120   ;;  %vm598_vm1 = vcmask 64512   ;;  %v868_v3 = vld [vmem:[%s1821_s4 + $0x10] sm:$0xff] }
  0x40   : > { %s1437_s1 = smov 112   ;;  %s1438_s23 = smov 96   ;;  %v867_v4 = vld [vmem:[%s1821_s4 + $0x8] sm:$0xff]  ;;  %vm862_vm2 = vcmask 130048   ;;  %vm864_vm3 = vcmask 195584   ;;  %vm981_vm8 = vcmask 523264  }
  0x41   : > { %s1439_s17 = smov 64   ;;  %s1440_s30 = smov 16  }
  0x42   : > { %s1441_s0 = smov 8   ;;  %s1442_s29 = smov 24  }
  0x43   : > { %s1864_s26 = sld [smem:[#allocation22_spill]] }
  0x44   : > { %v560_v0 = vld [vmem:[%s1862_s2 + $0x18] sm:$0xff]  ;;  %v559_v1 = vld [vmem:[%s1862_s2 + $0x10] sm:$0xff]  ;;  %v558_v2 = vld [vmem:[%s1862_s2 + $0x8] sm:$0xff] }
  0x45   : > { %581 = vmatpush.msra.mxu0 %v560_v0  ;;  %v557_v5 = vld [vmem:[%s1862_s2] sm:$0xff] }
  0x47   : > { %582 = vmatpush.msra.mxu0 %v559_v1 }
  0x49   : > { %583 = vmatpush.msra.mxu0 %v558_v2  ;;  %v869_v2 = vld [vmem:[%s1821_s4 + $0x18] sm:$0xff] }
  0x4b   : > { %584 = vmatpush.msra.mxu0 %v557_v5  ;;  %v866_v5 = vld [vmem:[%s1821_s4] sm:$0xff] }
  0x4c   : > { %1177 = vmatmul.msk.f32.vlgmr.msra.gmra.mxu0 %vm565_vm0, %v1648_v6 }
  0xc9   : > { %v586_v8 = vpop.f32.mrf.mxu0 }
  0xca   : > { %v1655_v9 = vadd.f32 %v1268_v7, %v586_v8 }
  0xcc   : > { %594 = vrot.lane.b32.xlu1 %v1655_v9, %s1435_s20  ;;  %590 = vrot.lane.b32.xlu0 %v1655_v9, %s1436_s15  ;;  %s1866_s20 = sld [smem:[#allocation21_spill]] }
  0xd4   : > { %592 = vrot.lane.b32.xlu0 %v1655_v9, %s1437_s1  ;;  %s1194_s1 = sshll.u32 %s1550_s25, 3  ;;  %s553_s25 = scalar_lea.vmem [#allocation7], %s1174_s19 }
  0xd5   : > { %s1082_s27 = scalar_lea.hbm %s1864_s26, %s1194_s1  ;;  %s1084_s15 = sshll.u32 %s553_s25, 4  ;;  %s1085_s15 = int_to_ptr.vmem [resolvable:$true] %s1084_s15 }
  0xd6   : > { %s1086_s2 = sshll.u32 %s1082_s27, 4  ;;  %s1382_s19 = scalar_lea.hbm %s1864_s26, 16  ;;  %s1087_s2 = int_to_ptr.hbm [resolvable:$true] %s1086_s2 }
 0x13e   : > { %v595_v10 = vpop.permute.xlu1 %594  ;;  %v1660_v11 = vpop.permute.xlu0 %590 }
 0x13f   : > { %675 = vrot.lane.b32.xlu0 %v595_v10, %s1438_s23  ;;  %623 = vrot.lane.b32.xlu1 %v1660_v11, %s1438_s23 }
 0x146   : > { %v593_v12 = vpop.permute.xlu0 %592 }
 0x147   : > { %649 = vrot.lane.b32.xlu2 %v593_v12, %s1438_s23  ;;  %v1263_v45 = vpack.i.bf16 %v593_v12, %v1660_v11 }
 0x14f   : > { %596 = vrot.lane.b32.xlu2 %v1655_v9, %s1438_s23  ;;  %s1072_s23 = scalar_lea.sflag [#allocation4], %s1622_s18 }
 0x1a1   : > { %v650_v13 = vpop.permute.xlu2 %649 }
 0x1a2   : > { %1182 = vmatpush.xpose.msk.msra.mxu3 %vm598_vm1, %v650_v13 }
 0x1a5   : > { %1183 = vmatmul.msk.f32.vlgmr.msra.gmra.mxu3 %vm598_vm1, %v593_v12 }
 0x1a9   : > { %v597_v14 = vpop.permute.xlu2 %596 }
 0x1aa   : > { %1178 = vmatpush.xpose.msk.msra.mxu1 %vm598_vm1, %v597_v14  ;;  %v1269_v14 = vld [vmem:[%s1822_s5] ss:$0 sm:$0xff] }
 0x1ad   : > { %1179 = vmatmul.msk.f32.vlgmr.msra.gmra.mxu1 %vm598_vm1, %v1655_v9 }
 0x1b1   : > { %v624_v15 = vpop.permute.xlu1 %623  ;;  %v676_v16 = vpop.permute.xlu0 %675 }
 0x1b2   : > { %1180 = vmatpush.xpose.msk.msra.mxu2 %vm598_vm1, %v624_v15  ;;  %1184 = vmatpush.xpose.msk.msrb.mxu1 %vm598_vm1, %v676_v16 }
 0x1b5   : > { %1181 = vmatmul.msk.f32.vlgmr.msra.gmra.mxu2 %vm598_vm1, %v1660_v11  ;;  %1185 = vmatmul.msk.f32.vlgmr.msrb.gmra.mxu1 %vm598_vm1, %v595_v10 }
 0x228   : > { %v672_v17 = vpop.f32.mrf.mxu3 }
 0x229   : > { %v707_v18 = vsel %vm598_vm1, %v672_v17, -inf }
 0x22a   : > { %708 = vmax.xlane.f32.xlu2 %v707_v18  ;;  %v620_v19 = vpop.f32.mrf.mxu1 }
 0x22b   : > { %v701_v20 = vsel %vm598_vm1, %v620_v19, -inf }
 0x232   : > { %702 = vmax.xlane.f32.xlu2 %v701_v20  ;;  %v698_v21 = vpop.f32.mrf.mxu1 }
 0x233   : > { %v710_v22 = vsel %vm598_vm1, %v698_v21, -inf }
 0x234   : > { %711 = vmax.xlane.f32.xlu0 %v710_v22 }
 0x238   : > { %v646_v23 = vpop.f32.mrf.mxu2 }
 0x239   : > { %v704_v24 = vsel %vm598_vm1, %v646_v23, -inf }
 0x23a   : > { %705 = vmax.xlane.f32.xlu1 %v704_v24 }
 0x29d   : > { %v709_v25 = vpop.xlane.xlu2 %708 }
 0x29e   : > { %v715_v26 = vsub.f32 %v672_v17, %v709_v25 }
 0x2a0   : > { %v721_v27 = vmul.f32 1.442695, %v715_v26 }
 0x2a2   : > { %1278 = vpow2.f32 %v721_v27 }
 0x2a5   : > { %v703_v28 = vpop.xlane.xlu2 %702 }
 0x2a6   : > { %v713_v32 = vsub.f32 %v620_v19, %v703_v28  ;;  %v1443_v19 = vmov 32.0  }
 0x2a7   : > { %v712_v29 = vpop.xlane.xlu0 %711 }
 0x2a8   : > { %v1279_v30 = vpop.eup %1278  ;;  %v716_v31 = vsub.f32 %v698_v21, %v712_v29  ;;  %v717_v35 = vmul.f32 1.442695, %v713_v32  ;;  %v938_v32 = vld [vmem:[%s1825_s8 + $0x8] sm:$0xff] }
 0x2a9   : > { %v731_v33 = vsel %vm598_vm1, %v1279_v30, 0.0 }
 0x2aa   : > { %v723_v34 = vmul.f32 1.442695, %v716_v31  ;;  %732 = vadd.xlane.f32.xlu2 %v731_v33  ;;  %v939_v31 = vld [vmem:[%s1825_s8 + $0x10] sm:$0xff]  ;;  %v937_v33 = vld [vmem:[%s1825_s8] sm:$0xff] }
 0x2ac   : > { %1280 = vpow2.f32 %v723_v34  ;;  %v976_v34 = vld [vmem:[%s1827_s10 + $0x38] sm:$0xff] }
 0x2ad   : > { %v706_v36 = vpop.xlane.xlu1 %705  ;;  %1282 = vpow2.f32 %v717_v35  ;;  %v975_v35 = vld [vmem:[%s1827_s10 + $0x30] sm:$0xff]  ;;  %993 = vmatpush.msrb.mxu0 %v976_v34 }
 0x2ae   : > { %v714_v37 = vsub.f32 %v646_v23, %v706_v36  ;;  %v974_v36 = vld [vmem:[%s1827_s10 + $0x28] sm:$0xff] }
 0x2af   : > { %994 = vmatpush.msrb.mxu0 %v975_v35 }
 0x2b0   : > { %v719_v38 = vmul.f32 1.442695, %v714_v37 }
 0x2b1   : > { %995 = vmatpush.msrb.mxu0 %v974_v36 }
 0x2b2   : > { %v1281_v39 = vpop.eup %1280  ;;  %1284 = vpow2.f32 %v719_v38 }
 0x2b3   : > { %v734_v40 = vsel %vm598_vm1, %v1281_v39, 0.0  ;;  %v1283_v41 = vpop.eup %1282 }
 0x2b4   : > { %735 = vadd.xlane.f32.xlu0 %v734_v40  ;;  %v725_v44 = vsel %vm598_vm1, %v1283_v41, 0.0 }
 0x2b8   : > { %v1285_v42 = vpop.eup %1284 }
 0x2b9   : > { %v728_v43 = vsel %vm598_vm1, %v1285_v42, 0.0 }
 0x2ba   : > { %729 = vadd.xlane.f32.xlu1 %v728_v43 }
 0x2bc   : > { %726 = vadd.xlane.f32.xlu0 %v725_v44 }
 0x2c2   : > { %823 = vrot.lane.b32.xlu2 %v595_v10, %s1439_s17 }
 0x2d0   : > { %745 = vrot.lane.b32.xlu0 %v1655_v9, %s1439_s17 }
 0x2d3   : > { %1264 = vrot.lane.b32.xlu1 %v1263_v45, %s1439_s17  ;;  %s1376_s17 = sshra.s32 %s1087_s2, 4  ;;  %s1377_s17 = int_to_ptr.hbm [resolvable:$true] %s1376_s17 }
 0x2d4   : > { %s1378_s1 = scalar_lea.hbm %s1377_s17, 8  ;;  %p1383_p9 = scmp.lt.s32.totalorder %s1377_s17, %s1864_s26 }
 0x2d5   : > { %p1379_p1 = scmp.ne.s32.totalorder %s1377_s17, %s1378_s1  ;;  %p1384_p10 = scmp.lt.s32.totalorder %s1382_s19, %s1378_s1 }
 0x2d7   : > { %p1380_p4 = pnand %p1379_p1, %p1595_p3  ;;  %p1385_p2 = por %p1384_p10, %p1383_p9 }
 0x2d9   : > { %p1381_p8 = pneg %p1380_p4 }
 0x2db   : > { %p1386_p11 = pnand %p1385_p2, %p1381_p8 }
 0x31d   : > { %v733_v48 = vpop.xlane.xlu2 %732 }
 0x325   : > { %v824_v60 = vpop.permute.xlu2 %823 }
 0x327   : > { %v736_v46 = vpop.xlane.xlu0 %735 }
 0x32d   : > { %v730_v49 = vpop.xlane.xlu1 %729 }
 0x32f   : > { %v727_v47 = vpop.xlane.xlu0 %726 }
 0x330   : > { %1286 = vrcp.f32 %v727_v47 }
 0x331   : > { %1288 = vrcp.f32 %v733_v48  ;;  %v1270_v48 = vld [vmem:[%s1823_s6] ss:$0 sm:$0xff] }
 0x332   : > { %1290 = vrcp.f32 %v730_v49 }
 0x333   : > { %1292 = vrcp.f32 %v736_v46 }
 0x334   : > { %1294 = vrcp.f32 %v1443_v19 }
 0x336   : > { %v1287_v50 = vpop.eup %1286 }
 0x337   : > { %v741_v52 = vmul.f32 %v1287_v50, %v1283_v41  ;;  %v1289_v53 = vpop.eup %1288  ;;  %v972_v41 = vld [vmem:[%s1827_s10 + $0x18] sm:$0xff] }
 0x338   : > { %v1291_v54 = vpop.eup %1290  ;;  %v743_v58 = vmul.f32 %v1289_v53, %v1279_v30  ;;  %v940_v30 = vld [vmem:[%s1825_s8 + $0x18] sm:$0xff] }
 0x339   : > { %v742_v59 = vmul.f32 %v1291_v54, %v1285_v42  ;;  %v1293_v61 = vpop.eup %1292  ;;  %v971_v54 = vld [vmem:[%s1827_s10 + $0x10] sm:$0xff] }
 0x33a   : > { %v744_v62 = vmul.f32 %v1293_v61, %v1281_v39  ;;  %v1295_v20 = vpop.eup %1294  ;;  %v973_v39 = vld [vmem:[%s1827_s10 + $0x20] sm:$0xff] }
 0x33b   : > { %v904_v21 = vmul.f32 32.0, %v1295_v20  ;;  %vm908_vm4 = vweird.f32 %v1295_v20  ;;  %996 = vmatpush.msrb.mxu0 %v973_v39  ;;  %v1273_v61 = vld [vmem:[%s1828_s11] ss:$0 sm:$0xff] }
 0x33d   : > { %v905_v22 = vsub.f32 1.0, %v904_v21  ;;  %997 = vmatpush.msrb.mxu0 %v972_v41 }
 0x33f   : > { %v906_v23 = vmul.f32 %v1295_v20, %v905_v22  ;;  %998 = vmatpush.msrb.mxu0 %v971_v54 }
 0x341   : > { %v907_v24 = vadd.f32 %v1295_v20, %v906_v23 }
 0x342   : > { %v746_v51 = vpop.permute.xlu0 %745 }
 0x343   : > { %766 = vmatpush.msrb.mxu2 %v746_v51  ;;  %v1707_v25 = vsel %vm908_vm4, %v1295_v20, %v907_v24  ;;  %v1271_v51 = vld [vmem:[%s1824_s7] ss:$0 sm:$0xff] }
 0x344   : > { %1186 = vmatmul.msk.f32.vlgmr.msrb.gmra.mxu2 %vm598_vm1, %v741_v52  ;;  %v1275_v20 = vld [vmem:[%s1830_s13] ss:$0 sm:$0xff] }
 0x345   : > { %v1265_v55 = vpop.permute.xlu1 %1264  ;;  %889 = vmatpush.msra.mxu2 %v869_v2 }
 0x346   : > { %v1267_v56 = vunpack.i.h.bf16 %v1265_v55  ;;  %v1266_v57 = vunpack.i.l.bf16 %v1265_v55  ;;  %v970_v55 = vld [vmem:[%s1827_s10 + $0x8] sm:$0xff] }
 0x347   : > { %890 = vmatpush.msra.mxu2 %v868_v3  ;;  %999 = vmatpush.msrb.mxu0 %v970_v55 }
 0x348   : > { %792 = vmatpush.msrb.mxu3 %v1266_v57  ;;  %818 = vmatpush.msra.mxu1 %v1267_v56  ;;  %v969_v56 = vld [vmem:[%s1827_s10] sm:$0xff] }
 0x349   : > { %1187 = vmatmul.msk.f32.vlgmr.msrb.gmra.mxu3 %vm598_vm1, %v742_v59  ;;  %1188 = vmatmul.msk.f32.vlgmr.msra.gmra.mxu1 %vm598_vm1, %v743_v58  ;;  %v1272_v57 = vld [vmem:[%s1826_s9] ss:$0 sm:$0xff] }
 0x34a   : > { %844 = vmatpush.msrb.mxu1 %v824_v60  ;;  %891 = vmatpush.msra.mxu2 %v867_v4 }
 0x34b   : > { %960 = vmatpush.msra.mxu3 %v940_v30  ;;  %1000 = vmatpush.msrb.mxu0 %v969_v56 }
 0x34c   : > { %892 = vmatpush.msra.mxu2 %v866_v5 }
 0x34d   : > { %961 = vmatpush.msra.mxu3 %v939_v31 }
 0x34f   : > { %962 = vmatpush.msra.mxu3 %v938_v32 }
 0x351   : > { %1189 = vmatmul.msk.f32.vlgmr.msrb.gmra.mxu1 %vm598_vm1, %v744_v62  ;;  %963 = vmatpush.msra.mxu3 %v937_v33 }
 0x3c6   : > { %v820_v63 = vpop.f32.mrf.mxu1 }
 0x3c7   : > { %854 = vrot.lane.b32.xlu2 %v820_v63, %s1440_s30  ;;  %v768_v8 = vpop.f32.mrf.mxu2  ;;  %s1863_s30 = sld [smem:[#allocation20_spill]] }
 0x3cc   : > { %v794_v0 = vpop.f32.mrf.mxu3 }
 0x3cd   : > { %850 = vrot.lane.b32.xlu1 %v794_v0, %s1441_s0 }
 0x3ce   : > { %v846_v1 = vpop.f32.mrf.mxu1 }
 0x3d5   : > { %858 = vrot.lane.b32.xlu1 %v846_v1, %s1442_s29 }
 0x421   : > { %v855_v10 = vpop.permute.xlu2 %854 }
 0x43f   : > { %v851_v7 = vpop.permute.xlu1 %850 }
 0x440   : > { %v861_v9 = vsel %vm598_vm1, %v768_v8, %v851_v7 }
 0x441   : > { %v863_v12 = vsel %vm862_vm2, %v861_v9, %v855_v10 }
 0x447   : > { %v859_v11 = vpop.permute.xlu1 %858 }
 0x448   : > { %v865_v13 = vsel %vm864_vm3, %v863_v12, %v859_v11 }
 0x449   : > { %1190 = vmatmul.msk.f32.vlgmr.msra.gmra.mxu2 %vm565_vm0, %v865_v13 }
 0x4cc   : > { %v894_v15 = vpop.f32.mrf.mxu2 }
 0x4cd   : > { %v895_v16 = vadd.f32 %v1269_v14, %v894_v15 }
 0x4cf   : > { %v897_v17 = vadd.f32 %v895_v16, %v1648_v6 }
 0x4d1   : > { %v900_v18 = vsel %vm565_vm0, %v897_v17, 0.0 }
 0x4d2   : > { %901 = vadd.xlane.f32.xlu0 %v900_v18 }
 0x545   : > { %v902_v26 = vpop.xlane.xlu0 %901 }
 0x546   : > { %v910_v27 = vmul.f32 %v1707_v25, %v902_v26 }
 0x548   : > { %v911_v28 = vsub.f32 %v897_v17, %v910_v27  ;;  %v1274_v17 = vld [vmem:[%s1829_s12] ss:$0 sm:$0xff] }
 0x54a   : > { %v912_v29 = vmul.f32 %v911_v28, %v911_v28 }
 0x54c   : > { %v913_v6 = vsel %vm565_vm0, %v912_v29, 0.0 }
 0x54d   : > { %914 = vadd.xlane.f32.xlu2 %v913_v6 }
 0x5c0   : > { %v915_v37 = vpop.xlane.xlu2 %914 }
 0x5c1   : > { %v916_v38 = vmul.f32 %v915_v37, %v1707_v25 }
 0x5c3   : > { %v917_v40 = vadd.f32 1e-05, %v916_v38  ;;  %v1276_v38 = vld [vmem:[%s1863_s30] ss:$0 sm:$0xff] }
 0x5c5   : > { %1296 = vrsqrt.f32 %v917_v40  ;;  %vm924_vm6 = vweird.f32 %v917_v40 }
 0x5cb   : > { %v1297_v42 = vpop.eup %1296 }
 0x5cc   : > { %v919_v43 = vmul.f32 %v1297_v42, %v917_v40  ;;  %vm925_vm5 = vweird.f32 %v1297_v42  ;;  %v1277_v40 = vld [vmem:[%s1866_s20] ss:$0 sm:$0xff] }
 0x5cd   : > { %vm926_vm7 = vmor %vm924_vm6, %vm925_vm5 }
 0x5ce   : > { %v920_v44 = vmul.f32 %v1297_v42, %v919_v43 }
 0x5d0   : > { %v921_v45 = vmul.f32 0.5, %v920_v44 }
 0x5d2   : > { %v922_v46 = vsub.f32 1.5, %v921_v45 }
 0x5d4   : > { %v923_v47 = vmul.f32 %v1297_v42, %v922_v46 }
 0x5d6   : > { %v927_v49 = vsel %vm926_vm7, %v1297_v42, %v923_v47 }
 0x5d7   : > { %v928_v50 = vmul.f32 %v927_v49, %v911_v28 }
 0x5d9   : > { %v932_v52 = vmul.f32 %v1270_v48, %v928_v50 }
 0x5db   : > { %v936_v53 = vadd.f32 %v1271_v51, %v932_v52 }
 0x5dd   : > { %1191 = vmatmul.msk.f32.vlgmr.msra.gmra.mxu3 %vm565_vm0, %v936_v53 }
 0x660   : > { %v965_v58 = vpop.f32.mrf.mxu3 }
 0x661   : > { %v966_v59 = vadd.f32 %v1272_v57, %v965_v58 }
 0x663   : > { %v968_v60 = vmax.f32 %v966_v59, 0.0 }
 0x665   : > { %1192 = vmatmul.msk.f32.vlgmr.msrb.gmra.mxu0 %vm981_vm8, %v968_v60 }
 0x6e2   : > { %v1002_v62 = vpop.f32.mrf.mxu0 }
 0x6e3   : > { %v1003_v63 = vadd.f32 %v1273_v61, %v1002_v62 }
 0x6e5   : > { %v1005_v0 = vadd.f32 %v1003_v63, %v936_v53 }
 0x6e7   : > { %v1008_v1 = vsel %vm565_vm0, %v1005_v0, 0.0 }
 0x6e8   : > { %1009 = vadd.xlane.f32.xlu1 %v1008_v1 }
 0x75b   : > { %v1010_v2 = vpop.xlane.xlu1 %1009 }
 0x75c   : > { %v1011_v3 = vmul.f32 %v1010_v2, %v1707_v25 }
 0x75e   : > { %v1012_v4 = vsub.f32 %v1005_v0, %v1011_v3 }
 0x760   : > { %v1013_v5 = vmul.f32 %v1012_v4, %v1012_v4 }
 0x762   : > { %v1014_v7 = vsel %vm565_vm0, %v1013_v5, 0.0 }
 0x763   : > { %1015 = vadd.xlane.f32.xlu0 %v1014_v7 }
 0x7d6   : > { %v1016_v8 = vpop.xlane.xlu0 %1015 }
 0x7d7   : > { %v1017_v9 = vmul.f32 %v1016_v8, %v1707_v25 }
 0x7d9   : > { %v1018_v10 = vadd.f32 1e-05, %v1017_v9 }
 0x7db   : > { %1298 = vrsqrt.f32 %v1018_v10  ;;  %vm1025_vm10 = vweird.f32 %v1018_v10 }
 0x7e1   : > { %v1299_v11 = vpop.eup %1298 }
 0x7e2   : > { %v1020_v12 = vmul.f32 %v1299_v11, %v1018_v10  ;;  %vm1026_vm9 = vweird.f32 %v1299_v11 }
 0x7e3   : > { %vm1027_vm11 = vmor %vm1025_vm10, %vm1026_vm9 }
 0x7e4   : > { %v1021_v13 = vmul.f32 %v1299_v11, %v1020_v12 }
 0x7e6   : > { %v1022_v14 = vmul.f32 0.5, %v1021_v13 }
 0x7e8   : > { %v1023_v15 = vsub.f32 1.5, %v1022_v14 }
 0x7ea   : > { %v1024_v16 = vmul.f32 %v1299_v11, %v1023_v15 }
 0x7ec   : > { %v1028_v18 = vsel %vm1027_vm11, %v1299_v11, %v1024_v16 }
 0x7ed   : > { %v1029_v19 = vmul.f32 %v1028_v18, %v1012_v4 }
 0x7ef   : > { %v1033_v21 = vmul.f32 %v1274_v17, %v1029_v19 }
 0x7f1   : > { %v1037_v22 = vadd.f32 %v1275_v20, %v1033_v21 }
 0x7f3   : > { %v1040_v23 = vsel %vm565_vm0, %v1037_v22, 0.0 }
 0x7f4   : > { %1041 = vadd.xlane.f32.xlu2 %v1040_v23 }
 0x867   : > { %v1042_v24 = vpop.xlane.xlu2 %1041 }
 0x868   : > { %v1043_v26 = vmul.f32 %v1042_v24, %v1707_v25 }
 0x86a   : > { %v1044_v27 = vsub.f32 %v1037_v22, %v1043_v26 }
 0x86c   : > { %v1045_v28 = vmul.f32 %v1044_v27, %v1044_v27 }
 0x86e   : > { %v1046_v29 = vsel %vm565_vm0, %v1045_v28, 0.0 }
 0x86f   : > { %1047 = vadd.xlane.f32.xlu1 %v1046_v29 }
 0x8e2   : > { %v1048_v6 = vpop.xlane.xlu1 %1047 }
 0x8e3   : > { %v1049_v30 = vmul.f32 %v1048_v6, %v1707_v25 }
 0x8e5   : > { %v1050_v31 = vadd.f32 1e-05, %v1049_v30 }
 0x8e7   : > { %1300 = vrsqrt.f32 %v1050_v31  ;;  %vm1057_vm13 = vweird.f32 %v1050_v31 }
 0x8ed   : > { %v1301_v32 = vpop.eup %1300 }
 0x8ee   : > { %v1052_v33 = vmul.f32 %v1301_v32, %v1050_v31  ;;  %vm1058_vm12 = vweird.f32 %v1301_v32 }
 0x8ef   : > { %vm1059_vm14 = vmor %vm1057_vm13, %vm1058_vm12 }
 0x8f0   : > { %v1053_v34 = vmul.f32 %v1301_v32, %v1052_v33 }
 0x8f2   : > { %v1054_v35 = vmul.f32 0.5, %v1053_v34 }
 0x8f4   : > { %v1055_v36 = vsub.f32 1.5, %v1054_v35 }
 0x8f6   : > { %v1056_v37 = vmul.f32 %v1301_v32, %v1055_v36 }
 0x8f8   : > { %v1060_v25 = vsel %vm1059_vm14, %v1301_v32, %v1056_v37 }
 0x8f9   : > { %v1061_v39 = vmul.f32 %v1060_v25, %v1044_v27 }
 0x8fb   : > { %v1065_v41 = vmul.f32 %v1276_v38, %v1061_v39 }
 0x8fd   : > { %v1069_v42 = vadd.f32 %v1277_v40, %v1065_v41 }
 0x8ff   : > { %1070 = vst.msk [vmem:[%s553_s25] sm:$0xff] %vm565_vm0, %v1069_v42 }
 0x900   : > { %1389 = shalt.err (!%p1386_p11)
}
 0x901   : > { %1203 = dma.vmem_to_hbm [thread:$0]  (%p1595_p3), %s1085_s15, 128, %s1087_s2, %s1072_s23  }
 0x902 PF: > { %s1867_s18 = sld [smem:[#allocation11_spill]]  ;;  %p1869_p12 = scmp.ge.s32.totalorder %s1432_s24, 2 }
 0x904   : > { %p1214_p13 = pnand %p1869_p12, %p1564_p6 }
 0x906   : > { %p1215_p0 = pneg %p1214_p13 }
 0x908   : > { %s1098_s28 = sand.u32 1, %s1867_s18  }
 0x909   : > { %s1099_s20 = scalar_lea.sflag [#allocation4], %s1098_s28 }
 0x90a   : > { %1415 = dma.done.wait (%p1215_p0), %s1099_s20, 128  }
 0x90b   : > { %1417 = vsyncadd (%p1215_p0), %s1099_s20, 4294967168  ;;  %s1870_s24 = sld [smem:[#allocation14_spill]]  ;;  %s1873_s21 = smov %s1424_s22 }
 0x90c   : > { %s1871_s25 = sld [smem:[#allocation12_spill]] }
 0x90d   : > { %s1872_s23 = sld [smem:[#allocation15_spill]] }
 0x911   : > { %p30_p5 = scmp.ge.s32.totalorder %s1870_s24, 4  }
 0x912   : > { %s1874_s22 = smov %s1871_s25 }
 0x913   :  { %32 = sbr.rel (!%p30_p5) target bundleno = 13 (0xd), region = 133 }
 0x918   :  { %1105 = vsyncpa [#allocation3], 1 }
 0x919   :  { %1107 = vsyncpa [#allocation3 + $0x1], 1 }
 0x91a   :  { %1108 = vsyncpa [#allocation6], 1 }
 0x91b   :  { %1109 = vsyncpa [#allocation4], 1 }
 0x91c   :  { %1111 = vsyncpa [#allocation4 + $0x1], 1 }

</bundles_post_ra>
